<compile_context>
chip_gen: v7x
topology: tpu7x:2x2x1
jax: 0.10.0
libtpu: 0.0.40
codegen_flags: <defaults>
</compile_context>

<pallas_src>
import functools

import jax
import jax.numpy as jnp
from jax import lax
from jax.experimental import pallas as pl
from jax.experimental.pallas import tpu as pltpu


def _simplex_kernel(a_ref, b_ref, w_ref, o_ref, *, g, mxu_dtype):
    # average_pooling: Linear(bias=False) on the sequence embedding.
    b = b_ref[...]
    w = w_ref[...]
    if b.dtype != mxu_dtype:
        b = b.astype(mxu_dtype)
    if w.dtype != mxu_dtype:
        w = w.astype(mxu_dtype)
    # bf16 x bf16 is MXU-native on v5e/v6e/v7x; only force HIGHEST for a pure-f32 path.
    precision = (lax.Precision.HIGHEST
                 if jnp.dtype(mxu_dtype) == jnp.dtype(jnp.float32) else None)
    y = jnp.dot(b, w, preferred_element_type=jnp.float32, precision=precision)

    a = a_ref[...]
    if a.dtype != jnp.float32:  # avoid a redundant cast when already f32
        a = a.astype(jnp.float32)

    # z = g * x + (1 - g) * y
    z = g * a + (1.0 - g) * y

    # F.normalize(z, p=2, dim=1, eps=1e-12):
    #   z / max(||z||, 1e-12) == z * rsqrt(max(sum(z^2), 1e-24))
    sumsq = jnp.sum(z * z, axis=-1, keepdims=True)
    inv = lax.rsqrt(jnp.maximum(sumsq, 1e-24))
    o_ref[...] = (z * inv).astype(o_ref.dtype)


def _pick_tm(B, budget_rows):
    """Batch tile: one grid step for small B, else the largest VMEM-fitting divisor."""
    if B <= 512 and B <= budget_rows:
        return B  # single step: per-step pipeline overhead dominates at small B
    for tm in (512, 256, 128, 64, 32, 16, 8):
        if tm <= budget_rows and B % tm == 0:
            return tm
    return B  # fallback: full-extent block is always a legal block shape


def simplex_user_forward(a, b, w, g, *, mxu_dtype=jnp.bfloat16):
    """a: [B, D] user emb, b: [B, D] item-seq emb, w: [D, D] (= torch weight.T)."""
    B, D = a.shape
    assert b.shape == (B, D) and w.shape == (D, D)
    g = float(g)  # construction-time hyperparameter (see module __init__)

    # Lane-dense insurance: pad D to a multiple of 128 so output stores are unmasked.
    # Exact: padded z columns are identically zero and do not change the L2 norm.
    Dp = ((D + 127) // 128) * 128
    if Dp != D:
        a = jnp.pad(a, ((0, 0), (0, Dp - D)))
        b = jnp.pad(b, ((0, 0), (0, Dp - D)))
        w = jnp.pad(w, ((0, Dp - D), (0, Dp - D)))

    act_bytes = jnp.dtype(a.dtype).itemsize
    out_bytes = act_bytes
    w_bytes = Dp * Dp * jnp.dtype(w.dtype).itemsize

    # Resident, grid-invariant weight. Single-buffer it once it is big enough to
    # matter so default double-buffering cannot blow v7x's 64 MiB (32 MiB scoped)
    # or v5e's 16 MiB default scoped VMEM at large D.
    if w_bytes > (4 << 20):
        w_spec = pl.BlockSpec((Dp, Dp), lambda i: (0, 0), pipeline_mode=pl.Buffered(1))
        w_bufs = 1
    else:
        w_spec = pl.BlockSpec((Dp, Dp), lambda i: (0, 0))
        w_bufs = 2

    # Size the batch tile against VMEM: double-buffered a/b/out tiles + resident W.
    per_row = 2 * Dp * (2 * act_bytes + out_bytes)
    budget_rows = max(8, ((40 << 20) - w_bufs * w_bytes) // max(per_row, 1))
    tm = _pick_tm(B, budget_rows)
    grid = (pl.cdiv(B, tm),)

    kernel = functools.partial(_simplex_kernel, g=g, mxu_dtype=mxu_dtype)

    cost = pl.CostEstimate(
        flops=2 * B * Dp * Dp,
        transcendentals=B,  # one rsqrt per row
        bytes_accessed=act_bytes * 2 * B * Dp + out_bytes * B * Dp + w_bytes,
    )

    # Only override the scoped-VMEM limit when the footprint actually needs it.
    est_vmem = w_bufs * w_bytes + 2 * tm * Dp * (2 * act_bytes + out_bytes) + (1 << 20)
    compiler_kwargs = {}
    if est_vmem > (16 << 20):
        compiler_kwargs["vmem_limit_bytes"] = int(min(est_vmem, 64 << 20))

    out = pl.pallas_call(
        kernel,
        out_shape=jax.ShapeDtypeStruct((B, Dp), a.dtype),
        grid=grid,
        in_specs=[
            pl.BlockSpec((tm, Dp), lambda i: (i, 0)),   # a: batch-tiled
            pl.BlockSpec((tm, Dp), lambda i: (i, 0)),   # b: batch-tiled
            w_spec,                                     # W: grid-invariant, VMEM-resident
        ],
        out_specs=pl.BlockSpec((tm, Dp), lambda i: (i, 0)),
        compiler_params=pltpu.CompilerParams(
            dimension_semantics=("parallel",),  # megacore split on v7x when grid > 1
            **compiler_kwargs,
        ),
        cost_estimate=cost,
    )(a, b, w)

    return out if Dp == D else out[:, :D]


def reference_forward(a, b, w, g):
    y = b @ w
    z = g * a + (1.0 - g) * y
    n = jnp.maximum(jnp.linalg.norm(z, axis=1, keepdims=True), 1e-12)
    return z / n


if __name__ == "__main__":
    # Small shapes consistent with the module:
    #   emb_size = 16, feature_count = 8  ->  emb_out_size D = 128
    batch = 48
    emb_size = 16
    feature_count = 8
    D = emb_size * feature_count
    g = 0.5

    key = jax.random.PRNGKey(0)
    k_a, k_b, k_w = jax.random.split(key, 3)

    # Simulated sparse-embedding outputs (NormalTensorInitializer(var=1e-4) scale).
    a = 0.01 * jax.random.normal(k_a, (batch, D), dtype=jnp.float32)
    b = 0.01 * jax.random.normal(k_b, (batch, D), dtype=jnp.float32)

    # Xavier-uniform init of the Linear weight [D, D]; stored transposed ([in, out]).
    bound = (6.0 / (D + D)) ** 0.5
    w_torch = jax.random.uniform(k_w, (D, D), minval=-bound, maxval=bound,
                                 dtype=jnp.float32)  # torch layout [out, in]
    w_f32 = w_torch.T                     # [in, out] for the kernel
    w_bf16 = w_f32.astype(jnp.bfloat16)   # stored MXU-native weight (halves D^2 DMA)

    # TODO(synk): ms.EmbeddingSumConcat sparse lookups / FTRL updater are host-side
    # feature-engine ops with no Pallas equivalent; their outputs are inputs here.

    out = simplex_user_forward(a, b, w_bf16, g)
    jax.block_until_ready(out)

    ref = reference_forward(a, b, w_f32, g)
    # bf16 matmul inputs with f32 accumulation: observed error ~3e-4 on unit-norm rows.
    assert jnp.allclose(out, ref, atol=3e-3, rtol=1e-3), "mismatch vs reference"

    print("KERNEL_OK")
</pallas_src>

<mosaic_0001>
module attributes {stable_mosaic.version = 11 : i64} {
  func.func @_simplex_kernel(%arg0: i32, %arg1: memref<48x128xf32, #tpu.memory_space<vmem>>, %arg2: memref<48x128xf32, #tpu.memory_space<vmem>>, %arg3: memref<128x128xbf16, #tpu.memory_space<vmem>>, %arg4: memref<48x128xf32, #tpu.memory_space<vmem>>) attributes {dimension_semantics = [#tpu.dimension_semantics<parallel>], iteration_bounds = array<i64: 1>, scalar_prefetch = 0 : i64, scratch_operands = 0 : i64, tpu.core_type = #tpu.core_type<tc>, window_params = [{transform_indices = @transform_0, window_bounds = array<i64: 48, 128>}, {transform_indices = @transform_1, window_bounds = array<i64: 48, 128>}, {pipeline_mode = #tpu.pipeline_mode<synchronous>, transform_indices = @transform_2, window_bounds = array<i64: 128, 128>}, {transform_indices = @transform_3, window_bounds = array<i64: 48, 128>}]} {
    %c0 = arith.constant 0 : index
    %c0_0 = arith.constant 0 : index
    %0 = vector.load %arg2[%c0, %c0_0] : memref<48x128xf32, #tpu.memory_space<vmem>>, vector<48x128xf32>
    %c0_1 = arith.constant 0 : index
    %c0_2 = arith.constant 0 : index
    %1 = vector.load %arg3[%c0_1, %c0_2] : memref<128x128xbf16, #tpu.memory_space<vmem>>, vector<128x128xbf16>
    %2 = arith.truncf %0 : vector<48x128xf32> to vector<48x128xbf16>
    %cst = arith.constant dense<0.000000e+00> : vector<48x128xf32>
    %3 = tpu.matmul %2, %1, %cst {dimension_numbers = #tpu.dot_dimension_numbers<[1], [0], [0], [1], [0, 0, 1, 1], [], []>} : vector<48x128xbf16>, vector<128x128xbf16>, vector<48x128xf32> -> vector<48x128xf32>
    %c0_3 = arith.constant 0 : index
    %c0_4 = arith.constant 0 : index
    %4 = vector.load %arg1[%c0_3, %c0_4] : memref<48x128xf32, #tpu.memory_space<vmem>>, vector<48x128xf32>
    %cst_5 = arith.constant 5.000000e-01 : f32
    %5 = vector.broadcast %cst_5 : f32 to vector<48x128xf32>
    %6 = arith.mulf %5, %4 : vector<48x128xf32>
    %cst_6 = arith.constant 5.000000e-01 : f32
    %7 = vector.broadcast %cst_6 : f32 to vector<48x128xf32>
    %8 = arith.mulf %7, %3 : vector<48x128xf32>
    %9 = arith.addf %6, %8 : vector<48x128xf32>
    %10 = arith.mulf %9, %9 : vector<48x128xf32>
    %cst_7 = arith.constant dense<0.000000e+00> : vector<48xf32>
    %11 = vector.multi_reduction <add>, %10, %cst_7 [1] : vector<48x128xf32> to vector<48xf32>
    %12 = vector.shape_cast %11 : vector<48xf32> to vector<48x1xf32>
    %cst_8 = arith.constant 1.000000e-24 : f32
    %13 = vector.broadcast %cst_8 : f32 to vector<48x1xf32>
    %14 = arith.maximumf %12, %13 : vector<48x1xf32>
    %15 = math.rsqrt %14 : vector<48x1xf32>
    %16 = vector.broadcast %15 : vector<48x1xf32> to vector<48x128xf32>
    %17 = arith.mulf %9, %16 : vector<48x128xf32>
    %c0_9 = arith.constant 0 : index
    %c0_10 = arith.constant 0 : index
    %18 = vector.load %arg4[%c0_9, %c0_10] : memref<48x128xf32, #tpu.memory_space<vmem>>, vector<48x128xf32>
    tpu.vector_store %arg4[%c0_9, %c0_10], %17 {strides = array<i32>} : memref<48x128xf32, #tpu.memory_space<vmem>>, vector<48x128xf32>,
    return
  }
  func.func @transform_0(%arg0: i32) -> (i32, i32) {
    %c0_i32 = arith.constant 0 : i32
    %c0_i32_0 = arith.constant 0 : i32
    return %arg0, %c0_i32 : i32, i32
  }
  func.func @transform_1(%arg0: i32) -> (i32, i32) {
    %c0_i32 = arith.constant 0 : i32
    %c0_i32_0 = arith.constant 0 : i32
    return %arg0, %c0_i32 : i32, i32
  }
  func.func @transform_2(%arg0: i32) -> (i32, i32) {
    %c0_i32 = arith.constant 0 : i32
    %c0_i32_0 = arith.constant 0 : i32
    %c0_i32_1 = arith.constant 0 : i32
    return %c0_i32, %c0_i32_0 : i32, i32
  }
  func.func @transform_3(%arg0: i32) -> (i32, i32) {
    %c0_i32 = arith.constant 0 : i32
    %c0_i32_0 = arith.constant 0 : i32
    return %arg0, %c0_i32 : i32, i32
  }
}

</mosaic_0001>

<bundles_post_ra>
// kernel: tpu_custom_call.1
= control target key start
LH: loop header
LB: loop body
LE: loop exit
PB: predicated region body
PF: predicated region fallthrough
CT: control target
= control target key end

     0   :  { %8 = vsyncpa [#allocation3], 0  ;;  %s555_s0 = inlined_call_operand.hbm [shape: f32[48,128], index: 0, kind: input, shape index: {}]   ;;  %s556_s1 = inlined_call_operand.hbm [shape: f32[48,128], index: 1, kind: input, shape index: {}]   ;;  %s557_s2 = inlined_call_operand.hbm [shape: bf16[128,128], index: 2, kind: input, shape index: {}]   ;;  %s558_s3 = inlined_call_operand.hbm [shape: f32[48,128], index: 3, kind: output, shape index: {}]  }
   0x1   :  { %9 = vsyncpa [#allocation6], 0 }
   0x2   :  { %10 = vsyncpa [#allocation4], 0  ;;  %s458_s12 = smov [#allocation5]   ;;  %s459_s14 = smov [#allocation2]  }
   0x3   :  { %s28_s13 = sshll.u32 %s458_s12, 4  ;;  %s16_s15 = sshll.u32 %s459_s14, 4  ;;  %s29_s13 = int_to_ptr.vmem [resolvable:$true] %s28_s13  ;;  %s488_s15 = int_to_ptr.vmem [resolvable:$true] %s16_s15 }
   0x4   :  { %s364_s18 = scalar_lea.hbm %s556_s1, 768 }
   0x5   :  { %p365_p0 = scmp.ne.s32.totalorder %s556_s1, %s364_s18  ;;  %p368_p1 = scmp.lt.u32.totalorder %s364_s18, %s556_s1 }
   0x7   :  { %p370_p2 = pnand %p368_p1, %p365_p0 }
   0x9   :  { %373 = shalt.err (!%p370_p2)
}
   0xa   :  { %s374_s23 = scalar_lea.vmem %s29_s13, 768  ;;  %p379_p4 = scmp.lt.s32.totalorder %s29_s13, %s29_s13 }
   0xb   :  { %p375_p3 = scmp.ne.s32.totalorder %s29_s13, %s374_s23  ;;  %p380_p5 = scmp.lt.s32.totalorder %s374_s23, %s374_s23 }
   0xd   :  { %p381_p6 = por %p380_p5, %p379_p4 }
   0xf   :  { %p382_p7 = pnand %p381_p6, %p375_p3 }
  0x11   :  { %385 = shalt.err (!%p382_p7)
}
  0x12   :  { %s460_s24 = smov 128   ;;  %s461_s25 = smov 8  }
  0x13   :  { %34 = dma.hbm_to_vmem [thread:$0]  %s556_s1, 768, %s29_s13, [#allocation6], %s460_s24, %s460_s24, %s461_s25  }
  0x14   :  { %s386_s30 = scalar_lea.hbm %s555_s0, 768 }
  0x15   :  { %p387_p8 = scmp.ne.s32.totalorder %s555_s0, %s386_s30  ;;  %p390_p9 = scmp.lt.u32.totalorder %s386_s30, %s555_s0 }
  0x17   :  { %p392_p10 = pnand %p390_p9, %p387_p8 }
  0x19   :  { %395 = shalt.err (!%p392_p10)
}
  0x1a   :  { %s396_s8 = scalar_lea.vmem %s488_s15, 768  ;;  %p401_p12 = scmp.lt.s32.totalorder %s488_s15, %s488_s15 }
  0x1b   :  { %p397_p11 = scmp.ne.s32.totalorder %s488_s15, %s396_s8  ;;  %p402_p13 = scmp.lt.s32.totalorder %s396_s8, %s396_s8 }
  0x1d   :  { %p403_p0 = por %p402_p13, %p401_p12 }
  0x1f   :  { %p404_p1 = pnand %p403_p0, %p397_p11 }
  0x21   :  { %407 = shalt.err (!%p404_p1)
}
  0x22   :  { %22 = dma.hbm_to_vmem [thread:$0]  %s555_s0, 768, %s488_s15, [#allocation3], %s460_s24, %s460_s24, %s461_s25  }
  0x23   :  { %s462_s10 = smov [#allocation7]   ;;  %s408_s14 = scalar_lea.hbm %s557_s2, 1024 }
  0x24   :  { %s40_s11 = sshll.u32 %s462_s10, 4  ;;  %p409_p2 = scmp.ne.s32.totalorder %s557_s2, %s408_s14  ;;  %s41_s11 = int_to_ptr.vmem [resolvable:$true] %s40_s11 }
  0x25   :  { %p412_p3 = scmp.lt.u32.totalorder %s408_s14, %s557_s2 }
  0x27   :  { %p414_p4 = pnand %p412_p3, %p409_p2 }
  0x29   :  { %417 = shalt.err (!%p414_p4)
}
  0x2a   :  { %s418_s20 = scalar_lea.vmem %s41_s11, 1024  ;;  %p423_p6 = scmp.lt.s32.totalorder %s41_s11, %s41_s11 }
  0x2b   :  { %p419_p5 = scmp.ne.s32.totalorder %s41_s11, %s418_s20  ;;  %p424_p7 = scmp.lt.s32.totalorder %s418_s20, %s418_s20 }
  0x2d   :  { %p425_p8 = por %p424_p7, %p423_p6 }
  0x2f   :  { %p426_p9 = pnand %p425_p8, %p419_p5 }
  0x31   :  { %429 = shalt.err (!%p426_p9)
}
  0x32   :  { %s463_s0 = smov 64   ;;  %s464_s15 = smov 4  }
  0x33   :  { %46 = dma.hbm_to_vmem [thread:$0]  %s557_s2, 1024, %s41_s11, [#allocation6], %s463_s0, %s463_s0, %s464_s15  }
  0x34   :  { %452 = dma.done.wait [#allocation3], 768  }
  0x35   :  { %453 = vsyncadd [#allocation3], 4294966528 }
  0x36   :  { %454 = dma.done.wait [#allocation6], 1792  }
  0x37   :  { %455 = vsyncadd [#allocation6], 4294965504  ;;  %v465_v0 = vmov 0.0   ;;  %vm466_vm0 = vmmov 0   ;;  %v344_v1 = vld [vmem:[#allocation7] sm:$0xff]   ;;  %v345_v2 = vld [vmem:[#allocation7 + $0x8] sm:$0xff]  }
  0x38   :  { %290 = vmatprep.subr.bf16.mxu0 %v465_v0  ;;  %318 = vmatprep.subr.bf16.mxu1 %v465_v0  ;;  %v346_v3 = vld [vmem:[#allocation7 + $0x10] sm:$0xff]   ;;  %v347_v4 = vld [vmem:[#allocation7 + $0x18] sm:$0xff]   ;;  %v348_v5 = vld [vmem:[#allocation7 + $0x20] sm:$0xff]   ;;  %s467_s2 = smov [#allocation8]  }
  0x39   :  { %306 = vmatprep.mubr.msk.bf16.mxu0 %vm466_vm0, %v465_v0  ;;  %310 = vmatprep.mubr.msk.bf16.mxu1 %vm466_vm0, %v465_v0  ;;  %v349_v6 = vld [vmem:[#allocation7 + $0x28] sm:$0xff]   ;;  %v350_v7 = vld [vmem:[#allocation7 + $0x30] sm:$0xff]   ;;  %v351_v8 = vld [vmem:[#allocation7 + $0x38] sm:$0xff]   ;;  %s258_s23 = sshll.u32 %s467_s2, 4  ;;  %s259_s23 = int_to_ptr.vmem [resolvable:$true] %s258_s23 }
  0x3a   :  { %291 = vmatpush3.bf16.msra.mxu0 %v344_v1  ;;  %326 = vmatpush3.bf16.msra.mxu1 %v344_v1  ;;  %v57_v9 = vld [vmem:[#allocation5] sm:$0xff]  ;;  %v58_v10 = vld [vmem:[#allocation5 + $0x8] sm:$0xff]  ;;  %v59_v11 = vld [vmem:[#allocation5 + $0x10] sm:$0xff]  ;;  %s430_s26 = scalar_lea.vmem %s259_s23, 768  ;;  %p435_p11 = scmp.lt.s32.totalorder %s259_s23, %s259_s23 }
  0x3b   :  { %292 = vmatprep.subr.bf16.mxu0 %v465_v0  ;;  %319 = vmatprep.subr.bf16.mxu1 %v465_v0  ;;  %v60_v12 = vld [vmem:[#allocation5 + $0x18] sm:$0xff]  ;;  %v79_v13 = vpack.c.bf16 %v58_v10, %v57_v9  ;;  %v61_v15 = vld [vmem:[#allocation5 + $0x20] sm:$0xff]  ;;  %v62_v16 = vld [vmem:[#allocation5 + $0x28] sm:$0xff]  ;;  %p431_p10 = scmp.ne.s32.totalorder %s259_s23, %s430_s26  ;;  %p436_p12 = scmp.lt.s32.totalorder %s430_s26, %s430_s26 }
  0x3c   :  { %v80_v14 = vpack.c.bf16 %v60_v12, %v59_v11  ;;  %v81_v17 = vpack.c.bf16 %v62_v16, %v61_v15  ;;  %v189_v18 = vld [vmem:[#allocation2 + $0x10] sm:$0xff]  ;;  %v187_v19 = vld [vmem:[#allocation2] sm:$0xff]  ;;  %v188_v20 = vld [vmem:[#allocation2 + $0x8] sm:$0xff] }
  0x3d   :  { %v190_v21 = vld [vmem:[#allocation2 + $0x18] sm:$0xff]  ;;  %v195_v22 = vmul.f32 0.5, %v189_v18  ;;  %v193_v23 = vmul.f32 0.5, %v187_v19  ;;  %v194_v30 = vmul.f32 0.5, %v188_v20  ;;  %v191_v40 = vld [vmem:[#allocation2 + $0x20] sm:$0xff]  ;;  %v192_v45 = vld [vmem:[#allocation2 + $0x28] sm:$0xff]  ;;  %p437_p13 = por %p436_p12, %p435_p11 }
  0x3e   :  { %293 = vmatpush3.bf16.msra.mxu0 %v345_v2  ;;  %327 = vmatpush3.bf16.msra.mxu1 %v345_v2  ;;  %v196_v31 = vmul.f32 0.5, %v190_v21  ;;  %v197_v46 = vmul.f32 0.5, %v191_v40  ;;  %v198_v50 = vmul.f32 0.5, %v192_v45 }
  0x3f   :  { %294 = vmatprep.subr.bf16.mxu0 %v465_v0  ;;  %320 = vmatprep.subr.bf16.mxu1 %v465_v0  ;;  %p438_p0 = pnand %p437_p13, %p431_p10 }
  0x42   :  { %295 = vmatpush3.bf16.msra.mxu0 %v346_v3  ;;  %328 = vmatpush3.bf16.msra.mxu1 %v346_v3 }
  0x43   :  { %296 = vmatprep.subr.bf16.mxu0 %v465_v0  ;;  %321 = vmatprep.subr.bf16.mxu1 %v465_v0 }
  0x46   :  { %297 = vmatpush3.bf16.msra.mxu0 %v347_v4  ;;  %329 = vmatpush3.bf16.msra.mxu1 %v347_v4 }
  0x47   :  { %298 = vmatprep.subr.bf16.mxu0 %v465_v0  ;;  %322 = vmatprep.subr.bf16.mxu1 %v465_v0 }
  0x4a   :  { %299 = vmatpush3.bf16.msra.mxu0 %v348_v5  ;;  %330 = vmatpush3.bf16.msra.mxu1 %v348_v5 }
  0x4b   :  { %300 = vmatprep.subr.bf16.mxu0 %v465_v0  ;;  %323 = vmatprep.subr.bf16.mxu1 %v465_v0 }
  0x4e   :  { %301 = vmatpush3.bf16.msra.mxu0 %v349_v6  ;;  %331 = vmatpush3.bf16.msra.mxu1 %v349_v6 }
  0x4f   :  { %302 = vmatprep.subr.bf16.mxu0 %v465_v0  ;;  %324 = vmatprep.subr.bf16.mxu1 %v465_v0 }
  0x52   :  { %303 = vmatpush3.bf16.msra.mxu0 %v350_v7  ;;  %332 = vmatpush3.bf16.msra.mxu1 %v350_v7 }
  0x53   :  { %304 = vmatprep.subr.bf16.mxu0 %v465_v0  ;;  %325 = vmatprep.subr.bf16.mxu1 %v465_v0 }
  0x56   :  { %305 = vmatpush3.bf16.msra.mxu0 %v351_v8  ;;  %333 = vmatpush3.bf16.msra.mxu1 %v351_v8 }
  0x59   :  { %307 = vmatmul.mubr.bf16.vlgmr.msra.gmra.mrb[0].mxu0 %v79_v13  ;;  %311 = vmatmul.mubr.bf16.vlgmr.msra.gmra.mrb[0].mxu1 %v80_v14 }
  0x5a   :  { %314 = vmatprep.mubr.msk.bf16.mxu1 %vm466_vm0, %v465_v0 }
  0x61   :  { %315 = vmatmul.mubr.bf16.gmra.mrb[4].mxu1 %v81_v17 }
 0x12c   :  { %v164_v24 = vpop.f32.mrb[0].mxu0  ;;  %v172_v25 = vpop.f32.mrb[0].mxu1 }
 0x12d   :  { %v199_v26 = vmul.f32 0.5, %v164_v24  ;;  %v201_v27 = vmul.f32 0.5, %v172_v25  ;;  %v308_v28 = vpop.f32.mrb[1].mxu0  ;;  %v312_v29 = vpop.f32.mrb[1].mxu1 }
 0x12e   :  { %v167_v32 = vpop.f32.mrb[2].mxu0  ;;  %v175_v33 = vpop.f32.mrb[2].mxu1 }
 0x12f   :  { %v200_v34 = vmul.f32 0.5, %v167_v32  ;;  %v202_v35 = vmul.f32 0.5, %v175_v33  ;;  %v309_v36 = vpop.f32.mrb[3].mxu0  ;;  %v313_v37 = vpop.f32.mrb[3].mxu1  ;;  %v207_v38 = vadd.f32 %v201_v27, %v195_v22  ;;  %v205_v39 = vadd.f32 %v199_v26, %v193_v23 }
 0x131   :  { %v206_v41 = vadd.f32 %v200_v34, %v194_v30  ;;  %v208_v42 = vadd.f32 %v202_v35, %v196_v31  ;;  %v213_v43 = vmul.f32 %v207_v38, %v207_v38  ;;  %v211_v44 = vmul.f32 %v205_v39, %v205_v39 }
 0x133   :  { %221 = vadd.xlane.f32.xlu1 %v213_v43  ;;  %217 = vadd.xlane.f32.xlu0 %v211_v44  ;;  %v214_v51 = vmul.f32 %v208_v42, %v208_v42  ;;  %v212_v52 = vmul.f32 %v206_v41, %v206_v41 }
 0x134   :  { %v180_v47 = vpop.f32.mrb[4].mxu1 }
 0x135   :  { %v203_v48 = vmul.f32 0.5, %v180_v47  ;;  %v316_v49 = vpop.f32.mrb[5].mxu1 }
 0x136   :  { %v183_v53 = vpop.f32.mrb[6].mxu1 }
 0x137   :  { %v209_v54 = vadd.f32 %v203_v48, %v197_v46  ;;  %v204_v55 = vmul.f32 0.5, %v183_v53  ;;  %223 = vadd.xlane.f32.xlu1 %v214_v51  ;;  %v317_v56 = vpop.f32.mrb[7].mxu1  ;;  %219 = vadd.xlane.f32.xlu0 %v212_v52 }
 0x139   :  { %v210_v57 = vadd.f32 %v204_v55, %v198_v50  ;;  %v215_v58 = vmul.f32 %v209_v54, %v209_v54 }
 0x13b   :  { %225 = vadd.xlane.f32.xlu0 %v215_v58  ;;  %v216_v59 = vmul.f32 %v210_v57, %v210_v57 }
 0x13d   :  { %227 = vadd.xlane.f32.xlu1 %v216_v59 }
 0x1c0   :  { %v222_v60 = vpop.xlane.xlu1 %221  ;;  %v218_v61 = vpop.xlane.xlu0 %217 }
 0x1c1   :  { %v231_v62 = vmax.f32 %v222_v60, 1e-24  ;;  %v229_v63 = vmax.f32 %v218_v61, 1e-24 }
 0x1c3   :  { %352 = vrsqrt.f32 %v231_v62 }
 0x1c4   :  { %354 = vrsqrt.f32 %v229_v63  ;;  %v224_v0 = vpop.xlane.xlu1 %223  ;;  %v220_v1 = vpop.xlane.xlu0 %219 }
 0x1c5   :  { %v232_v2 = vmax.f32 %v224_v0, 1e-24  ;;  %v230_v3 = vmax.f32 %v220_v1, 1e-24 }
 0x1c7   :  { %356 = vrsqrt.f32 %v232_v2 }
 0x1c8   :  { %358 = vrsqrt.f32 %v230_v3  ;;  %v226_v4 = vpop.xlane.xlu0 %225 }
 0x1c9   :  { %v233_v5 = vmax.f32 %v226_v4, 1e-24 }
 0x1ca   :  { %v228_v6 = vpop.xlane.xlu1 %227 }
 0x1cb   :  { %360 = vrsqrt.f32 %v233_v5  ;;  %v234_v7 = vmax.f32 %v228_v6, 1e-24 }
 0x1cd   :  { %v353_v8 = vpop.eup %352  ;;  %362 = vrsqrt.f32 %v234_v7 }
 0x1ce   :  { %v355_v9 = vpop.eup %354  ;;  %v243_v10 = vmul.f32 %v353_v8, %v207_v38 }
 0x1cf   :  { %v241_v11 = vmul.f32 %v355_v9, %v205_v39 }
 0x1d0   :  { %249 = vst [vmem:[#allocation8 + $0x10] sm:$0xff] %v243_v10 }
 0x1d1   :  { %v357_v12 = vpop.eup %356  ;;  %247 = vst [vmem:[#allocation8] sm:$0xff] %v241_v11 }
 0x1d2   :  { %v359_v13 = vpop.eup %358  ;;  %v244_v14 = vmul.f32 %v357_v12, %v208_v42 }
 0x1d3   :  { %v242_v15 = vmul.f32 %v359_v13, %v206_v41 }
 0x1d4   :  { %250 = vst [vmem:[#allocation8 + $0x18] sm:$0xff] %v244_v14 }
 0x1d5   :  { %v361_v16 = vpop.eup %360  ;;  %248 = vst [vmem:[#allocation8 + $0x8] sm:$0xff] %v242_v15 }
 0x1d6   :  { %v245_v17 = vmul.f32 %v361_v16, %v209_v54 }
 0x1d7   :  { %v363_v18 = vpop.eup %362 }
 0x1d8   :  { %251 = vst [vmem:[#allocation8 + $0x20] sm:$0xff] %v245_v17  ;;  %v246_v19 = vmul.f32 %v363_v18, %v210_v57 }
 0x1da   :  { %252 = vst [vmem:[#allocation8 + $0x28] sm:$0xff] %v246_v19 }
 0x1db   :  { %441 = shalt.err (!%p438_p0)
}
 0x1dc   :  { %s442_s29 = scalar_lea.hbm %s558_s3, 768 }
 0x1dd   :  { %p443_p1 = scmp.ne.s32.totalorder %s558_s3, %s442_s29  ;;  %p446_p2 = scmp.lt.u32.totalorder %s442_s29, %s558_s3 }
 0x1df   :  { %p448_p3 = pnand %p446_p2, %p443_p1 }
 0x1e1   :  { %451 = shalt.err (!%p448_p3)
}
 0x1e2   :  { %264 = dma.vmem_to_hbm [thread:$0]  %s259_s23, 768, %s558_s3, [#allocation4], %s460_s24, %s460_s24, %s461_s25  }
 0x1e3   :  { %456 = dma.done.wait [#allocation4], 768  }
 0x1e4   :  { %457 = vsyncadd [#allocation4], 4294966528 }
 0x1e5   :  { %268 = vsyncpa [#allocation3], 1 }
 0x1e6   :  { %269 = vsyncpa [#allocation6], 1 }
 0x1e7   :  { %270 = vsyncpa [#allocation4], 1 }

</bundles_post_ra>
